<compile_context>
chip_gen: v5e
topology: v5e:2x2
jax: 0.10.0
libtpu: 0.0.40
codegen_flags: <defaults>
</compile_context>

<pallas_src>
import functools

import jax
import jax.numpy as jnp
from jax.experimental import pallas as pl
from jax.experimental.pallas import tpu as pltpu

_LANE = 128
_ACC_ROWS = 8                            # f32 sublane tile; per-core accumulator height
_TARGET_BLOCK_BYTES = 4 * 1024 * 1024    # HBM bytes streamed per grid step (v7x-sized)
_MAX_TILE_ROWS = 8192                    # caps in-kernel f32 temporaries in VMEM
_SUBLANE_MULT = {4: 8, 2: 16, 1: 32}     # itemsize -> minimum sublane tile


def _elem_loss(p_f32, mode, target):
    """Per-element loss in f32 for a constant 0/1 target."""
    if mode == "lsgan":
        d = p_f32 - jnp.float32(target)
        return d * d
    # vanilla == BCEWithLogitsLoss with a constant target in {0, 1}:
    #   t=1 -> softplus(-x), t=0 -> softplus(x), numerically stable form
    #   softplus(z) = max(z, 0) + log1p(exp(-|z|)).
    # TODO(synk): ~2 EUP transcendentals/element; on v6e/v7x this can become
    # EUP-bound — a bf16 exp/log1p (f32 accumulate) or a short VPU polynomial
    # for log1p would move it back toward the HBM roofline.
    z = -p_f32 if target == 1.0 else p_f32
    return jnp.maximum(z, 0.0) + jnp.log1p(jnp.exp(-jnp.abs(z)))


@functools.lru_cache(maxsize=None)
def _num_tensorcores():
    """TensorCores per chip: 2 only on megacore-style chips (v4 / v7x), else 1."""
    try:
        info = pltpu.get_tpu_info()
        for name in ("num_cores", "core_count", "num_tensorcores",
                     "tensorcores_per_chip"):
            v = getattr(info, name, None)
            if isinstance(v, int) and v > 0:
                return min(int(v), 2)
    except Exception:
        pass
    try:
        kind = jax.devices()[0].device_kind.lower()
        if any(tag in kind for tag in ("v7", "tpu7", "v4")):
            return 2
    except Exception:
        pass
    return 1


def _adv_loss_kernel(x_ref, acc_ref, *, mode, target, tile_r, acc_rows,
                     spc, steps_total, valid_rows, ragged):
    c = pl.program_id(0)            # core-split axis ("parallel")
    i = pl.program_id(1)            # streaming / reduction axis ("arbitrary")
    chunk = c * spc + i             # logical (unclamped) row-block index

    p = x_ref[...].astype(jnp.float32)     # HBM stream stays in the native dtype
    loss = _elem_loss(p, mode, target)

    def _reduce(v):
        # (tile_r, 128) -> (acc_rows, 128): reshape groups contiguous sublane
        # octets (layout no-op), sum(axis=0) is a VPU tree add.
        if tile_r == acc_rows:
            return v
        return v.reshape(tile_r // acc_rows, acc_rows, _LANE).sum(axis=0)

    def _accum(v):
        # Zero-init folded into the first accumulate.
        @pl.when(i == 0)
        def _():
            acc_ref[...] = v

        @pl.when(i > 0)
        def _():
            acc_ref[...] += v

    if not ragged:
        # Every chunk is fully valid: plain hot path, no masking anywhere.
        _accum(_reduce(loss))
    else:
        # Only the last logical chunk (and the clamped duplicate beyond it when
        # steps_total % nc != 0) can contain invalid rows.  Any chunk with
        # chunk >= steps_total has chunk*tile_r >= valid_rows, so the row mask
        # below zeroes it out entirely.
        boundary = chunk >= steps_total - 1

        @pl.when(jnp.logical_not(boundary))
        def _():
            _accum(_reduce(loss))

        @pl.when(boundary)
        def _():
            # Row-granular mask: no global element index => no i32 overflow.
            row = jax.lax.broadcasted_iota(jnp.int32, (tile_r, _LANE), 0)
            keep = (chunk * tile_r + row) < valid_rows
            _accum(_reduce(jnp.where(keep, loss, 0.0)))


def adversarial_loss(pred, target_is_real: bool, mode: str = "lsgan",
                     max_tile_rows: int = _MAX_TILE_ROWS):
    """Pallas equivalent of AdversarialLoss(mode)(pred, target_is_real)."""
    if mode not in ("lsgan", "vanilla"):
        raise ValueError(f"Unsupported adversarial loss mode: {mode}")

    target = 1.0 if target_is_real else 0.0
    n = pred.size
    flat = pred.reshape(-1)                  # metadata-only reshape

    # Lane-ragged tail (< 128 elements) is reduced wrapper-side: no full-array
    # pad copy, and the kernel only ever sees lane-aligned data.
    rem = n % _LANE
    main_n = n - rem
    rows = main_n // _LANE

    tail_sum = jnp.float32(0.0)
    if rem:
        tail_sum = jnp.sum(
            _elem_loss(flat[main_n:].astype(jnp.float32), mode, target))
    if rows == 0:
        return tail_sum / jnp.float32(n)

    x2 = (flat if rem == 0 else flat[:main_n]).reshape(rows, _LANE)

    itemsize = x2.dtype.itemsize
    sub = _SUBLANE_MULT.get(itemsize, 8)

    if rows < sub:
        # Tiny input: one block equal to the full array dims (always a legal
        # block shape); the accumulator matches it.
        tile_r = rows
        acc_rows = rows
    else:
        # Byte-sized tiles: ~_TARGET_BLOCK_BYTES of HBM per grid step (more
        # rows for narrower dtypes), capped so f32 compute temporaries fit in
        # scoped VMEM, floored to the dtype's sublane multiple and to <= rows.
        byte_rows = max(sub, _TARGET_BLOCK_BYTES // (_LANE * itemsize))
        cap = (rows // sub) * sub
        tile_r = min(byte_rows, max_tile_rows, cap)
        tile_r = max(sub, (tile_r // sub) * sub)
        acc_rows = _ACC_ROWS

    steps_total = -(-rows // tile_r)                    # ceil
    nc = max(1, min(_num_tensorcores(), steps_total))   # 1 on v5e/v6e, 2 on megacore
    spc = -(-steps_total // nc)                         # steps per core
    ragged = (rows % tile_r != 0) or (spc * nc != steps_total)

    kernel = functools.partial(
        _adv_loss_kernel, mode=mode, target=target, tile_r=tile_r,
        acc_rows=acc_rows, spc=spc, steps_total=steps_total,
        valid_rows=rows, ragged=ragged)

    # Clamp the input block index so grid over-coverage (steps_total % nc != 0)
    # never DMAs past the array; the duplicate chunk is fully masked in-kernel.
    in_map = lambda c, i: (jnp.minimum(c * spc + i, steps_total - 1), 0)
    out_map = lambda c, i: (c, 0)          # per-core (acc_rows,128) partial sum

    # NOTE: the leading "parallel" axis is intended to shard across the two
    # TensorCores on megacore chips (v7x); if a trace shows it running
    # serially, switch that axis to pltpu.CORE_PARALLEL.
    partials = pl.pallas_call(
        kernel,
        out_shape=jax.ShapeDtypeStruct((nc * acc_rows, _LANE), jnp.float32),
        grid=(nc, spc),
        in_specs=[pl.BlockSpec((tile_r, _LANE), in_map)],
        out_specs=pl.BlockSpec((acc_rows, _LANE), out_map),
        compiler_params=pltpu.CompilerParams(
            dimension_semantics=("parallel", "arbitrary"),
            vmem_limit_bytes=48 * 1024 * 1024),
    )(x2)

    # Tiny final reduce (a few KiB) + mean.
    return (jnp.sum(partials) + tail_sum) / jnp.float32(n)


def _reference(pred, target_is_real: bool, mode: str):
    t = jnp.float32(1.0 if target_is_real else 0.0)
    p = pred.astype(jnp.float32)
    if mode == "lsgan":
        return jnp.mean((p - t) ** 2)
    return jnp.mean(jnp.maximum(p, 0.0) - p * t + jnp.log1p(jnp.exp(-jnp.abs(p))))


if __name__ == "__main__":
    key = jax.random.PRNGKey(0)
    k1, k2, k3, k4 = jax.random.split(key, 4)

    # (pred, max_tile_rows) cases:
    #  1) small discriminator-style map, lane-aligned, single full-dim block
    #  2) bf16 input (native-dtype streaming, in-kernel cast)
    #  3) multi-block + (on megacore) 2-way core split (small tile cap)
    #  4) ragged size (wrapper lane-tail + in-kernel boundary row mask)
    cases = [
        (jax.random.normal(k1, (2, 1, 16, 16), dtype=jnp.float32), _MAX_TILE_ROWS),
        (jax.random.normal(k2, (2, 1, 16, 16), dtype=jnp.float32).astype(jnp.bfloat16),
         _MAX_TILE_ROWS),
        (jax.random.normal(k3, (2, 4, 16, 16), dtype=jnp.float32), 8),
        (jax.random.normal(k4, (2, 3, 10, 20), dtype=jnp.float32), 8),
    ]

    ok = True
    for pred, mtr in cases:
        for mode in ("lsgan", "vanilla"):
            for target_is_real in (True, False):
                out = adversarial_loss(pred, target_is_real, mode=mode,
                                       max_tile_rows=mtr)
                out = jax.block_until_ready(out)
                ref = _reference(pred, target_is_real, mode)
                if not jnp.allclose(out, ref, atol=1e-5, rtol=1e-4):
                    ok = False
                    print(f"MISMATCH shape={pred.shape} dtype={pred.dtype} "
                          f"mode={mode} real={target_is_real}: {out} vs {ref}")

    if ok:
        print("KERNEL_OK")
</pallas_src>

<mosaic_0001>
module attributes {stable_mosaic.version = 11 : i64} {
  func.func @_adv_loss_kernel(%arg0: i32, %arg1: i32, %arg2: memref<4x128xf32, #tpu.memory_space<vmem>>, %arg3: memref<4x128xf32, #tpu.memory_space<vmem>>) attributes {dimension_semantics = [#tpu.dimension_semantics<parallel>, #tpu.dimension_semantics<arbitrary>], iteration_bounds = array<i64: 1, 1>, scalar_prefetch = 0 : i64, scratch_operands = 0 : i64, tpu.core_type = #tpu.core_type<tc>, window_params = [{transform_indices = @transform_0, window_bounds = array<i64: 4, 128>}, {transform_indices = @transform_1, window_bounds = array<i64: 4, 128>}]} {
    %c0 = arith.constant 0 : index
    %c0_0 = arith.constant 0 : index
    %0 = vector.load %arg2[%c0, %c0_0] : memref<4x128xf32, #tpu.memory_space<vmem>>, vector<4x128xf32>
    %cst = arith.constant 1.000000e+00 : f32
    %1 = vector.broadcast %cst : f32 to vector<4x128xf32>
    %2 = arith.subf %0, %1 : vector<4x128xf32>
    %3 = arith.mulf %2, %2 : vector<4x128xf32>
    %c0_i32 = arith.constant 0 : i32
    %4 = arith.cmpi eq, %arg1, %c0_i32 : i32
    %5 = arith.extui %4 : i1 to i32
    %c0_i32_1 = arith.constant 0 : i32
    %6 = arith.cmpi ne, %5, %c0_i32_1 : i32
    scf.if %6 {
      %c0_4 = arith.constant 0 : index
      %c0_5 = arith.constant 0 : index
      %10 = vector.load %arg3[%c0_4, %c0_5] : memref<4x128xf32, #tpu.memory_space<vmem>>, vector<4x128xf32>
      tpu.vector_store %arg3[%c0_4, %c0_5], %3 {strides = array<i32>} : memref<4x128xf32, #tpu.memory_space<vmem>>, vector<4x128xf32>,
    } else {
    }
    %c0_i32_2 = arith.constant 0 : i32
    %7 = arith.cmpi sgt, %arg1, %c0_i32_2 : i32
    %8 = arith.extui %7 : i1 to i32
    %c0_i32_3 = arith.constant 0 : i32
    %9 = arith.cmpi ne, %8, %c0_i32_3 : i32
    scf.if %9 {
      %c0_4 = arith.constant 0 : index
      %c0_5 = arith.constant 0 : index
      %10 = vector.load %arg3[%c0_4, %c0_5] : memref<4x128xf32, #tpu.memory_space<vmem>>, vector<4x128xf32>
      %11 = arith.addf %10, %3 : vector<4x128xf32>
      %c0_6 = arith.constant 0 : index
      %c0_7 = arith.constant 0 : index
      %12 = vector.load %arg3[%c0_6, %c0_7] : memref<4x128xf32, #tpu.memory_space<vmem>>, vector<4x128xf32>
      tpu.vector_store %arg3[%c0_6, %c0_7], %11 {strides = array<i32>} : memref<4x128xf32, #tpu.memory_space<vmem>>, vector<4x128xf32>,
    } else {
    }
    return
  }
  func.func @transform_0(%arg0: i32, %arg1: i32) -> (i32, i32) {
    %c1_i32 = arith.constant 1 : i32
    %0 = arith.muli %arg0, %c1_i32 : i32
    %1 = arith.addi %0, %arg1 : i32
    %c0_i32 = arith.constant 0 : i32
    %2 = arith.minsi %1, %c0_i32 : i32
    %c0_i32_0 = arith.constant 0 : i32
    %c0_i32_1 = arith.constant 0 : i32
    return %2, %c0_i32_0 : i32, i32
  }
  func.func @transform_1(%arg0: i32, %arg1: i32) -> (i32, i32) {
    %c0_i32 = arith.constant 0 : i32
    %c0_i32_0 = arith.constant 0 : i32
    return %arg0, %c0_i32 : i32, i32
  }
}

</mosaic_0001>

<bundles_post_ra>
// kernel: tpu_custom_call.1
= control target key start
LH: loop header
LB: loop body
LE: loop exit
PB: predicated region body
PF: predicated region fallthrough
CT: control target
= control target key end

     0   :  { %6 = vsyncpa [#allocation3], 0  ;;  %s138_s0 = inlined_call_operand.hbm [shape: f32[4,128], index: 0, kind: input, shape index: {}]   ;;  %s139_s1 = inlined_call_operand.hbm [shape: f32[4,128], index: 1, kind: output, shape index: {}]  }
   0x1   :  { %7 = vsyncpa [#allocation4], 0  ;;  %s18_s8 = sshll.u32 %s138_s0, 4  ;;  %s120_s9 = smov [#allocation2]   ;;  %s19_s8 = int_to_ptr.hbm [resolvable:$true] %s18_s8 }
   0x2   :  { %s20_s10 = sshll.u32 %s120_s9, 4  ;;  %s21_s10 = int_to_ptr.vmem [resolvable:$true] %s20_s10 }
   0x3   :  { %23 = dma.hbm_to_vmem [thread:$0]  %s19_s8, 64, %s21_s10, [#allocation3]  }
   0x4   :  { %116 = dma.done.wait [#allocation3], 64  }
   0x5   :  { %117 = vsyncadd [#allocation3], 4294967232  ;;  %v31_v0 = vld [vmem:[#allocation2] sm:$0xf]  ;;  %s121_s11 = smov [#allocation5]   ;;  %s53_s15 = sshll.u32 %s139_s1, 4  ;;  %s54_s15 = int_to_ptr.hbm [resolvable:$true] %s53_s15 }
   0x6   :  { %s51_s12 = sshll.u32 %s121_s11, 4  ;;  %v65_v1 = vadd.f32 -1.0, %v31_v0  ;;  %s52_s12 = int_to_ptr.vmem [resolvable:$true] %s51_s12 }
   0x8   :  { %v33_v2 = vmul.f32 %v65_v1, %v65_v1 }
   0xa   :  { %38 = vst [vmem:[#allocation5] sm:$0xf] %v33_v2 }
   0xb   :  { %56 = dma.vmem_to_hbm [thread:$0]  %s52_s12, 64, %s54_s15, [#allocation4]  }
   0xc   :  { %118 = dma.done.wait [#allocation4], 64  }
   0xd   :  { %119 = vsyncadd [#allocation4], 4294967232 }
   0xe   :  { %61 = vsyncpa [#allocation3], 1 }
   0xf   :  { %62 = vsyncpa [#allocation4], 1 }

</bundles_post_ra>
